<compile_context>
chip_gen: v7x
topology: tpu7x:2x2x1
jax: 0.10.0
libtpu: 0.0.40
codegen_flags: <defaults>
</compile_context>

<pallas_src>
import functools

import jax
import jax.numpy as jnp
from jax import lax
from jax.experimental import pallas as pl
from jax.experimental.pallas import tpu as pltpu


def _conv3x3_bn_relu_kernel(x_ref, wT_ref, vecs_ref, o_ref, p_ref, *, row_pitch):
    """One batch element per grid step.

    x_ref   : (1, Cin, Lin)    flattened, zero-padded per-channel image
                               (row pitch = W + 2, Lin = (H + 3) * (W + 2))
    wT_ref  : (Cout, 9*Cin)    fused depthwise * pointwise * BN1 weights
    vecs_ref: (Cout, 3)        columns = [fused bias b1, BN2 scale, BN2 shift]
    o_ref   : (1, Cout, Lfat)  "fat" NCHW output, Lfat = H * (W + 2)
    p_ref   : (9*Cin, Lfat)    VMEM scratch: im2col^T of the 9 shifted taps
    """
    cin = x_ref.shape[1]
    lfat = o_ref.shape[2]

    x = x_ref[0]  # (Cin, Lin) f32, tiny

    # Build im2col^T: tap (kh, kw) is the flat image shifted by kh*pitch + kw.
    for t in range(9):
        kh, kw = divmod(t, 3)
        shift = kh * row_pitch + kw
        p_ref[t * cin:(t + 1) * cin, :] = x[:, shift:shift + lfat]

    # Whole depthwise-separable conv (+ BN1 scale) as ONE MXU matmul, K = 9*Cin.
    # Kept in f32 to match PyTorch numerics (on v6e one could cast operands to
    # bf16 with preferred_element_type=f32 for more MXU throughput).
    y = jnp.dot(wT_ref[...], p_ref[...], preferred_element_type=jnp.float32)

    b1 = vecs_ref[:, 0:1]   # fused (depthwise bias -> pointwise -> BN1) shift
    s2 = vecs_ref[:, 1:2]   # outer BN scale
    t2 = vecs_ref[:, 2:3]   # outer BN shift
    y = jnp.maximum(y + b1, 0.0)            # conv + BN1 + ReLU
    y = jnp.maximum(y * s2 + t2, 0.0)       # BN2 + ReLU

    o_ref[...] = y[None].astype(o_ref.dtype)


@jax.jit
def conv3x3_bn_relu(x_nchw, params):
    """Forward pass of Conv3x3BNReLU.  x_nchw: (N, Cin, H, W) float32 NCHW."""
    wd, bd, wp, bp, s1, t1, s2, t2 = params
    N, Cin, H, W = x_nchw.shape
    Cout = wp.shape[1]

    # ---- fold depthwise + pointwise + BN1 into one weight matrix + bias ----
    wd9 = wd.reshape(9, Cin)                                   # (kh*3+kw, c)
    wfull = (wd9[:, :, None] * wp[None, :, :]).reshape(9 * Cin, Cout)
    wfull = wfull * s1[None, :]
    wT = jnp.transpose(wfull)                                  # (Cout, 9*Cin)
    b1 = (bd @ wp + bp) * s1 + t1                              # (Cout,)
    vecs = jnp.stack([b1, s2, t2], axis=1)                     # (Cout, 3)

    # ---- layout: NCHW kept; zero-pad and flatten each channel's image ------
    pitch = W + 2                 # padded row pitch
    lfat = H * pitch              # "fat" output length per channel
    lin = (H + 3) * pitch         # 1 top pad row, 2 bottom pad rows (shift slack)
    x_flat = jnp.pad(x_nchw, ((0, 0), (0, 0), (1, 2), (1, 1))).reshape(N, Cin, lin)

    kernel = functools.partial(_conv3x3_bn_relu_kernel, row_pitch=pitch)

    out_fat = pl.pallas_call(
        kernel,
        out_shape=jax.ShapeDtypeStruct((N, Cout, lfat), jnp.float32),
        grid_spec=pltpu.PrefetchScalarGridSpec(
            num_scalar_prefetch=0,
            grid=(N,),
            in_specs=[
                pl.BlockSpec((1, Cin, lin), lambda n: (n, 0, 0)),
                pl.BlockSpec((Cout, 9 * Cin), lambda n: (0, 0)),
                pl.BlockSpec((Cout, 3), lambda n: (0, 0)),
            ],
            out_specs=pl.BlockSpec((1, Cout, lfat), lambda n: (n, 0, 0)),
            scratch_shapes=[pltpu.VMEM((9 * Cin, lfat), jnp.float32)],
        ),
        compiler_params=pltpu.CompilerParams(
            dimension_semantics=("parallel",),
            # Footprint here is ~100 KiB; explicit cap stays well under v7x's
            # 64 MiB physical VMEM so larger configs fail loudly, not slowly.
            vmem_limit_bytes=48 * 1024 * 1024),
    )(x_flat, wT, vecs)

    # Drop the 2 garbage pad columns per row.  reshape is a free bitcast; the
    # slice is a small strided copy (replaces the old full NHWC->NCHW transpose).
    return out_fat.reshape(N, Cout, H, pitch)[:, :, :, :W]


def make_params(key, cin, cout):
    """Deterministic synthetic parameters matching the module's shapes."""
    k1, k2, k3, k4 = jax.random.split(key, 4)
    # depth_conv: Conv2d(cin, cin, 3, padding=1, groups=cin); weight (cin,1,3,3)
    wd_t = jax.random.normal(k1, (cin, 1, 3, 3), jnp.float32) * 0.2
    bd = jax.random.normal(k2, (cin,), jnp.float32) * 0.1
    # point_conv: Conv2d(cin, cout, 1); weight (cout,cin,1,1)
    wp_t = jax.random.normal(k3, (cout, cin, 1, 1), jnp.float32) * 0.2
    bp = jax.random.normal(k4, (cout,), jnp.float32) * 0.1

    wd = jnp.transpose(wd_t[:, 0, :, :], (1, 2, 0))            # (3, 3, cin)
    wp = jnp.transpose(wp_t[:, :, 0, 0], (1, 0))               # (cin, cout)

    # Both BatchNorm2d layers: default init (gamma=1, beta=0, mean=0, var=1,
    # eps=1e-5), evaluated in inference mode -> per-channel scale / shift.
    eps = 1e-5
    gamma = jnp.ones((cout,), jnp.float32)
    beta = jnp.zeros((cout,), jnp.float32)
    mean = jnp.zeros((cout,), jnp.float32)
    var = jnp.ones((cout,), jnp.float32)
    scale = gamma / jnp.sqrt(var + eps)
    shift = beta - mean * scale
    return (wd, bd, wp, bp, scale, shift, scale, shift)


def reference_forward(x_nchw, params):
    """Pure-JAX reference (lax.conv) of the same forward pass."""
    wd, bd, wp, bp, s1, t1, s2, t2 = params
    cin = x_nchw.shape[1]
    cout = wp.shape[1]
    # depthwise conv: NCHW, OIHW with feature_group_count=cin
    wd_oihw = jnp.transpose(wd, (2, 0, 1))[:, None, :, :]       # (cin,1,3,3)
    y = lax.conv_general_dilated(
        x_nchw, wd_oihw, window_strides=(1, 1), padding=((1, 1), (1, 1)),
        dimension_numbers=("NCHW", "OIHW", "NCHW"), feature_group_count=cin)
    y = y + bd.reshape(1, cin, 1, 1)
    # pointwise conv
    wp_oihw = jnp.transpose(wp, (1, 0))[:, :, None, None]       # (cout,cin,1,1)
    y = lax.conv_general_dilated(
        y, wp_oihw, window_strides=(1, 1), padding=((0, 0), (0, 0)),
        dimension_numbers=("NCHW", "OIHW", "NCHW"))
    y = y + bp.reshape(1, cout, 1, 1)
    y = jnp.maximum(y * s1.reshape(1, cout, 1, 1) + t1.reshape(1, cout, 1, 1), 0.0)
    y = jnp.maximum(y * s2.reshape(1, cout, 1, 1) + t2.reshape(1, cout, 1, 1), 0.0)
    return y


if __name__ == "__main__":
    key = jax.random.PRNGKey(0)
    kx, kp = jax.random.split(key)

    N, Cin, Cout, H, W = 2, 4, 8, 16, 16
    x = jax.random.normal(kx, (N, Cin, H, W), jnp.float32)
    params = make_params(kp, Cin, Cout)

    out = jax.block_until_ready(conv3x3_bn_relu(x, params))
    ref = jax.block_until_ready(reference_forward(x, params))

    assert out.shape == (N, Cout, H, W), out.shape
    max_err = float(jnp.max(jnp.abs(out - ref)))
    assert jnp.allclose(out, ref, atol=1e-4, rtol=1e-4), max_err

    print("KERNEL_OK")
</pallas_src>

<mosaic_0001>
module attributes {stable_mosaic.version = 11 : i64} {
  func.func @_conv3x3_bn_relu_kernel(%arg0: i32, %arg1: memref<1x4x342xf32, #tpu.memory_space<vmem>>, %arg2: memref<8x36xf32, #tpu.memory_space<vmem>>, %arg3: memref<8x3xf32, #tpu.memory_space<vmem>>, %arg4: memref<1x8x288xf32, #tpu.memory_space<vmem>>, %arg5: memref<36x288xf32, #tpu.memory_space<vmem>>) attributes {dimension_semantics = [#tpu.dimension_semantics<parallel>], iteration_bounds = array<i64: 2>, scalar_prefetch = 0 : i64, scratch_operands = 1 : i64, tpu.core_type = #tpu.core_type<tc>, window_params = [{transform_indices = @transform_0, window_bounds = array<i64: 1, 4, 342>}, {pipeline_mode = #tpu.pipeline_mode<synchronous>, transform_indices = @transform_1, window_bounds = array<i64: 8, 36>}, {pipeline_mode = #tpu.pipeline_mode<synchronous>, transform_indices = @transform_2, window_bounds = array<i64: 8, 3>}, {transform_indices = @transform_3, window_bounds = array<i64: 1, 8, 288>}]} {
    %c0 = arith.constant 0 : index
    %c0_0 = arith.constant 0 : index
    %c0_1 = arith.constant 0 : index
    %0 = vector.load %arg1[%c0, %c0_0, %c0_1] : memref<1x4x342xf32, #tpu.memory_space<vmem>>, vector<1x4x342xf32>
    %1 = vector.shape_cast %0 : vector<1x4x342xf32> to vector<4x342xf32>
    %2 = vector.extract_strided_slice %1 {offsets = [0, 0], sizes = [4, 288], strides = [1, 1]} : vector<4x342xf32> to vector<4x288xf32>
    %c0_2 = arith.constant 0 : index
    %c0_3 = arith.constant 0 : index
    %3 = vector.load %arg5[%c0_2, %c0_3] : memref<36x288xf32, #tpu.memory_space<vmem>>, vector<4x288xf32>
    tpu.vector_store %arg5[%c0_2, %c0_3], %2 {strides = array<i32>} : memref<36x288xf32, #tpu.memory_space<vmem>>, vector<4x288xf32>,
    %4 = vector.extract_strided_slice %1 {offsets = [0, 1], sizes = [4, 288], strides = [1, 1]} : vector<4x342xf32> to vector<4x288xf32>
    %c4 = arith.constant 4 : index
    %c0_4 = arith.constant 0 : index
    %5 = vector.load %arg5[%c4, %c0_4] : memref<36x288xf32, #tpu.memory_space<vmem>>, vector<4x288xf32>
    tpu.vector_store %arg5[%c4, %c0_4], %4 {strides = array<i32>} : memref<36x288xf32, #tpu.memory_space<vmem>>, vector<4x288xf32>,
    %6 = vector.extract_strided_slice %1 {offsets = [0, 2], sizes = [4, 288], strides = [1, 1]} : vector<4x342xf32> to vector<4x288xf32>
    %c8 = arith.constant 8 : index
    %c0_5 = arith.constant 0 : index
    %7 = vector.load %arg5[%c8, %c0_5] : memref<36x288xf32, #tpu.memory_space<vmem>>, vector<4x288xf32>
    tpu.vector_store %arg5[%c8, %c0_5], %6 {strides = array<i32>} : memref<36x288xf32, #tpu.memory_space<vmem>>, vector<4x288xf32>,
    %8 = vector.extract_strided_slice %1 {offsets = [0, 18], sizes = [4, 288], strides = [1, 1]} : vector<4x342xf32> to vector<4x288xf32>
    %c12 = arith.constant 12 : index
    %c0_6 = arith.constant 0 : index
    %9 = vector.load %arg5[%c12, %c0_6] : memref<36x288xf32, #tpu.memory_space<vmem>>, vector<4x288xf32>
    tpu.vector_store %arg5[%c12, %c0_6], %8 {strides = array<i32>} : memref<36x288xf32, #tpu.memory_space<vmem>>, vector<4x288xf32>,
    %10 = vector.extract_strided_slice %1 {offsets = [0, 19], sizes = [4, 288], strides = [1, 1]} : vector<4x342xf32> to vector<4x288xf32>
    %c16 = arith.constant 16 : index
    %c0_7 = arith.constant 0 : index
    %11 = vector.load %arg5[%c16, %c0_7] : memref<36x288xf32, #tpu.memory_space<vmem>>, vector<4x288xf32>
    tpu.vector_store %arg5[%c16, %c0_7], %10 {strides = array<i32>} : memref<36x288xf32, #tpu.memory_space<vmem>>, vector<4x288xf32>,
    %12 = vector.extract_strided_slice %1 {offsets = [0, 20], sizes = [4, 288], strides = [1, 1]} : vector<4x342xf32> to vector<4x288xf32>
    %c20 = arith.constant 20 : index
    %c0_8 = arith.constant 0 : index
    %13 = vector.load %arg5[%c20, %c0_8] : memref<36x288xf32, #tpu.memory_space<vmem>>, vector<4x288xf32>
    tpu.vector_store %arg5[%c20, %c0_8], %12 {strides = array<i32>} : memref<36x288xf32, #tpu.memory_space<vmem>>, vector<4x288xf32>,
    %14 = vector.extract_strided_slice %1 {offsets = [0, 36], sizes = [4, 288], strides = [1, 1]} : vector<4x342xf32> to vector<4x288xf32>
    %c24 = arith.constant 24 : index
    %c0_9 = arith.constant 0 : index
    %15 = vector.load %arg5[%c24, %c0_9] : memref<36x288xf32, #tpu.memory_space<vmem>>, vector<4x288xf32>
    tpu.vector_store %arg5[%c24, %c0_9], %14 {strides = array<i32>} : memref<36x288xf32, #tpu.memory_space<vmem>>, vector<4x288xf32>,
    %16 = vector.extract_strided_slice %1 {offsets = [0, 37], sizes = [4, 288], strides = [1, 1]} : vector<4x342xf32> to vector<4x288xf32>
    %c28 = arith.constant 28 : index
    %c0_10 = arith.constant 0 : index
    %17 = vector.load %arg5[%c28, %c0_10] : memref<36x288xf32, #tpu.memory_space<vmem>>, vector<4x288xf32>
    tpu.vector_store %arg5[%c28, %c0_10], %16 {strides = array<i32>} : memref<36x288xf32, #tpu.memory_space<vmem>>, vector<4x288xf32>,
    %18 = vector.extract_strided_slice %1 {offsets = [0, 38], sizes = [4, 288], strides = [1, 1]} : vector<4x342xf32> to vector<4x288xf32>
    %c32 = arith.constant 32 : index
    %c0_11 = arith.constant 0 : index
    %19 = vector.load %arg5[%c32, %c0_11] : memref<36x288xf32, #tpu.memory_space<vmem>>, vector<4x288xf32>
    tpu.vector_store %arg5[%c32, %c0_11], %18 {strides = array<i32>} : memref<36x288xf32, #tpu.memory_space<vmem>>, vector<4x288xf32>,
    %c0_12 = arith.constant 0 : index
    %c0_13 = arith.constant 0 : index
    %20 = vector.load %arg2[%c0_12, %c0_13] : memref<8x36xf32, #tpu.memory_space<vmem>>, vector<8x36xf32>
    %c0_14 = arith.constant 0 : index
    %c0_15 = arith.constant 0 : index
    %21 = vector.load %arg5[%c0_14, %c0_15] : memref<36x288xf32, #tpu.memory_space<vmem>>, vector<36x288xf32>
    %cst = arith.constant dense<0.000000e+00> : vector<8x288xf32>
    %22 = tpu.matmul %20, %21, %cst {dimension_numbers = #tpu.dot_dimension_numbers<[1], [0], [0], [1], [0, 0, 1, 1], [], []>} : vector<8x36xf32>, vector<36x288xf32>, vector<8x288xf32> -> vector<8x288xf32>
    %c0_16 = arith.constant 0 : index
    %c0_17 = arith.constant 0 : index
    %23 = vector.load %arg3[%c0_16, %c0_17] : memref<8x3xf32, #tpu.memory_space<vmem>>, vector<8x1xf32>
    %c0_18 = arith.constant 0 : index
    %c1 = arith.constant 1 : index
    %24 = vector.load %arg3[%c0_18, %c1] : memref<8x3xf32, #tpu.memory_space<vmem>>, vector<8x1xf32>
    %c0_19 = arith.constant 0 : index
    %c2 = arith.constant 2 : index
    %25 = vector.load %arg3[%c0_19, %c2] : memref<8x3xf32, #tpu.memory_space<vmem>>, vector<8x1xf32>
    %26 = vector.broadcast %23 : vector<8x1xf32> to vector<8x288xf32>
    %27 = arith.addf %22, %26 : vector<8x288xf32>
    %cst_20 = arith.constant 0.000000e+00 : f32
    %28 = vector.broadcast %cst_20 : f32 to vector<8x288xf32>
    %29 = arith.maximumf %27, %28 : vector<8x288xf32>
    %30 = vector.broadcast %24 : vector<8x1xf32> to vector<8x288xf32>
    %31 = arith.mulf %29, %30 : vector<8x288xf32>
    %32 = vector.broadcast %25 : vector<8x1xf32> to vector<8x288xf32>
    %33 = arith.addf %31, %32 : vector<8x288xf32>
    %cst_21 = arith.constant 0.000000e+00 : f32
    %34 = vector.broadcast %cst_21 : f32 to vector<8x288xf32>
    %35 = arith.maximumf %33, %34 : vector<8x288xf32>
    %36 = vector.shape_cast %35 : vector<8x288xf32> to vector<1x8x288xf32>
    %c0_22 = arith.constant 0 : index
    %c0_23 = arith.constant 0 : index
    %c0_24 = arith.constant 0 : index
    %37 = vector.load %arg4[%c0_22, %c0_23, %c0_24] : memref<1x8x288xf32, #tpu.memory_space<vmem>>, vector<1x8x288xf32>
    tpu.vector_store %arg4[%c0_22, %c0_23, %c0_24], %36 {strides = array<i32>} : memref<1x8x288xf32, #tpu.memory_space<vmem>>, vector<1x8x288xf32>,
    return
  }
  func.func @transform_0(%arg0: i32) -> (i32, i32, i32) {
    %c0_i32 = arith.constant 0 : i32
    %c0_i32_0 = arith.constant 0 : i32
    %c0_i32_1 = arith.constant 0 : i32
    return %arg0, %c0_i32, %c0_i32_0 : i32, i32, i32
  }
  func.func @transform_1(%arg0: i32) -> (i32, i32) {
    %c0_i32 = arith.constant 0 : i32
    %c0_i32_0 = arith.constant 0 : i32
    %c0_i32_1 = arith.constant 0 : i32
    return %c0_i32, %c0_i32_0 : i32, i32
  }
  func.func @transform_2(%arg0: i32) -> (i32, i32) {
    %c0_i32 = arith.constant 0 : i32
    %c0_i32_0 = arith.constant 0 : i32
    %c0_i32_1 = arith.constant 0 : i32
    return %c0_i32, %c0_i32_0 : i32, i32
  }
  func.func @transform_3(%arg0: i32) -> (i32, i32, i32) {
    %c0_i32 = arith.constant 0 : i32
    %c0_i32_0 = arith.constant 0 : i32
    %c0_i32_1 = arith.constant 0 : i32
    return %arg0, %c0_i32, %c0_i32_0 : i32, i32, i32
  }
}

</mosaic_0001>

<bundles_post_ra>
// kernel: conv3x3_bn_relu.1
= control target key start
LH: loop header
LB: loop body
LE: loop exit
PB: predicated region body
PF: predicated region fallthrough
CT: control target
= control target key end

     0   :  { %s680_s12 = smov 0   ;;  %s733_s0 = inlined_call_operand.vmem [shape: f32[2,4,342], index: 0, kind: input, shape index: {}]   ;;  %s734_s1 = inlined_call_operand.vmem [shape: f32[8,36], index: 1, kind: input, shape index: {}]   ;;  %s735_s2 = inlined_call_operand.vmem [shape: f32[8,3], index: 2, kind: input, shape index: {}]   ;;  %s736_s3 = inlined_call_operand.vmem [shape: f32[2,8,288], index: 3, kind: output, shape index: {}]  }
   0x1 LB: > { %s560_s13 = sadd.s32 4294967295, %s644_s12   ;;  %p564_p0 = scmp.ge.s32.totalorder %s644_s12, 1  ;;  %s644_s12 = sphi %s680_s12, %s13_s12  }
   0x2   : > { %p137_p1 = scmp.lt.s32.totalorder %s644_s12, 3 }
   0x4   : > { %p138_p2 = pnand %p564_p0, %p137_p1 }
   0x5   : > { %p161_p3 = scmp.lt.s32.totalorder (!%p138_p2), %s560_s13, 1  ;;  %vm179_vm0 = vcmask (!%p138_p2), 257024   ;;  %s646_s18 = smov (!%p138_p2), 126   ;;  %v649_v4 = vmov (!%p138_p2), 0.0|0.0   ;;  %v654_v6 = vmov (!%p138_p2), 0.0   ;;  %vm656_vm1 = vmmov (!%p138_p2), 0  }
   0x6   : > { %141 = sbr.rel (%p138_p2) target bundleno = 413 (0x19d), region = 32  ;;  %s647_s19 = smov (!%p138_p2), 127   ;;  %601 = vmatprep.subr.bf16.mxu1 (!%p138_p2), %v649_v4  ;;  %404 = vmatprep.mubr.f32.mxu0 (!%p138_p2), %v654_v6  ;;  %v657_v7 = vmov (!%p138_p2), 0   ;;  %v658_v8 = vmov (!%p138_p2), 1   ;;  %v320_v9 = vld [vmem:[%s735_s2] sm:$0xff] (!%p138_p2)  ;;  %v659_v10 = vmov (!%p138_p2), 2  }
   0x7   : > { %s648_s20 = smov (!%p138_p2), 110   ;;  %s650_s21 = smov (!%p138_p2), 109   ;;  %590 = vmatprep.mubr.msk.f32.mxu1 (!%p138_p2), %vm656_vm1, %v654_v6  ;;  %631 = vset.pattern.permute.xlu0 (!%p138_p2), %v657_v7  ;;  %vm205_vm2 = vcmask (!%p138_p2), 1031168   ;;  %vm189_vm3 = vcmask (!%p138_p2), 1039360   ;;  %vm197_vm4 = vcmask (!%p138_p2), 261124   ;;  %vm220_vm5 = vcmask (!%p138_p2), 900096  }
   0x8   : > { %s651_s22 = smov (!%p138_p2), 108   ;;  %s652_s23 = smov (!%p138_p2), 92   ;;  %632 = vset.pattern.permute.xlu1 (!%p138_p2), %v658_v8  ;;  %vm235_vm6 = vcmask (!%p138_p2), 891904   ;;  %vm250_vm7 = vcmask (!%p138_p2), 883712   ;;  %vm265_vm8 = vcmask (!%p138_p2), 752640   ;;  %vm280_vm9 = vcmask (!%p138_p2), 744448  }
   0x9   : > { %s653_s24 = smov (!%p138_p2), 91   ;;  %s655_s25 = smov (!%p138_p2), 90   ;;  %vm295_vm10 = vcmask (!%p138_p2), 736256   ;;  %vm330_vm11 = vcmask (!%p138_p2), 1043456   ;;  %vm326_vm12 = vcmask (!%p138_p2), 293888   ;;  %vm503_vm13 = vcmask (!%p138_p2), 261120  }
   0xd   : > { %s738_s13 = smov (!%p161_p3, %s560_s13), 1 }
   0xe   : > { %s607_s14 = smul.u32 12, %s738_s13 }
   0xf   : > { %s608_s30 = smul.u32 24, %s738_s13 }
  0x10   : > { %s165_s17 = scalar_lea.vmem %s733_s0, %s607_s14 }
  0x11   : > { %v172_v0 = vld [vmem:[%s165_s17 + $0x8] sm:$0xf]  ;;  %v171_v1 = vld [vmem:[%s165_s17] sm:$0xff]  ;;  %s170_s6 = scalar_lea.vmem %s736_s3, %s608_s30 }
  0x12   : > { %203 = vrot.lane.b32.xlu1 %v172_v0, %s646_s18  ;;  %177 = vst [vmem:[#allocation2] sm:$0xf] %v171_v1  ;;  %185 = vrot.lane.b32.xlu0 %v171_v1, %s647_s19  ;;  %v175_v2 = vcombine.high %v171_v1, %v171_v1  ;;  %180 = vst.msk [vmem:[#allocation2 + $0x10] sm:$0xf] %vm179_vm0, %v172_v0  ;;  %v182_v3 = vcombine.low %v172_v0, %v172_v0 }
  0x13   : > { %v181_v5 = vcombine.low %v171_v1, %v171_v1 }
  0x14   : > { %178 = vst [vmem:[#allocation2 + $0x8] sm:$0xf] %v175_v2 }
  0x16   : > { %216 = vrot.lane.b32.xlu0 %v171_v1, %s648_s20  ;;  %201 = vrot.lane.b32.xlu1 %v175_v2, %s646_s18 }
  0x1a   : > { %187 = vrot.lane.b32.xlu0 %v182_v3, %s647_s19  ;;  %218 = vrot.lane.b32.xlu1 %v182_v3, %s648_s20 }
  0x1e   : > { %183 = vrot.lane.b32.xlu0 %v181_v5, %s647_s19  ;;  %199 = vrot.lane.b32.xlu1 %v171_v1, %s646_s18 }
  0x22   : > { %214 = vrot.lane.b32.xlu0 %v181_v5, %s648_s20  ;;  %231 = vrot.lane.b32.xlu1 %v175_v2, %s650_s21 }
  0x26   : > { %233 = vrot.lane.b32.xlu0 %v172_v0, %s650_s21  ;;  %246 = vrot.lane.b32.xlu1 %v171_v1, %s651_s22 }
  0x2a   : > { %248 = vrot.lane.b32.xlu0 %v182_v3, %s651_s22  ;;  %261 = vrot.lane.b32.xlu1 %v175_v2, %s652_s23 }
  0x2e   : > { %263 = vrot.lane.b32.xlu0 %v172_v0, %s652_s23  ;;  %276 = vrot.lane.b32.xlu1 %v171_v1, %s653_s24 }
  0x32   : > { %278 = vrot.lane.b32.xlu0 %v182_v3, %s653_s24  ;;  %229 = vrot.lane.b32.xlu1 %v171_v1, %s650_s21 }
  0x36   : > { %244 = vrot.lane.b32.xlu0 %v181_v5, %s651_s22  ;;  %259 = vrot.lane.b32.xlu1 %v171_v1, %s652_s23 }
  0x3a   : > { %274 = vrot.lane.b32.xlu0 %v181_v5, %s653_s24  ;;  %291 = vrot.lane.b32.xlu1 %v175_v2, %s655_s25  ;;  %v304_v5 = vld [vmem:[%s734_s1] sm:$0xff] }
  0x3e   : > { %293 = vrot.lane.b32.xlu0 %v172_v0, %s655_s25  ;;  %289 = vrot.lane.b32.xlu1 %v171_v1, %s655_s25 }
  0x42   : > { %323 = vperm.xlu0 %631, %v320_v9   ;;  %485 = vperm.xlu1 %632, %v320_v9  }
  0x46   : > { %633 = vset.pattern.permute.xlu1 %v659_v10  ;;  %634 = vset.pattern.permute.xlu0 %v659_v10 }
  0x47   : > { %492 = vperm.xlu1 %633, %v320_v9  }
  0x84   : > { %v204_v11 = vpop.permute.xlu1 %203  ;;  %v186_v12 = vpop.permute.xlu0 %185 }
  0x85   : > { %213 = vst.msk [vmem:[#allocation2 + $0x28] sm:$0xf] %vm179_vm0, %v204_v11 }
  0x88   : > { %v217_v13 = vpop.permute.xlu0 %216  ;;  %v202_v14 = vpop.permute.xlu1 %201 }
  0x89   : > { %v207_v15 = vsel %vm205_vm2, %v202_v14, %v204_v11 }
  0x8a   : > { %212 = vst [vmem:[#allocation2 + $0x20] sm:$0xf] %v207_v15 }
  0x8c   : > { %v188_v16 = vpop.permute.xlu0 %187  ;;  %v219_v17 = vpop.permute.xlu1 %218 }
  0x8d   : > { %v191_v18 = vsel %vm189_vm3, %v186_v12, %v188_v16  ;;  %198 = vst.msk [vmem:[#allocation2 + $0x10] sm:$0xf0] %vm197_vm4, %v188_v16  ;;  %v222_v19 = vsel %vm220_vm5, %v217_v13, %v219_v17  ;;  %228 = vst.msk [vmem:[#allocation2 + $0x28] sm:$0xf0] %vm197_vm4, %v219_v17 }
  0x8e   : > { %196 = vst [vmem:[#allocation2 + $0x8] sm:$0xf0] %v191_v18  ;;  %227 = vst [vmem:[#allocation2 + $0x20] sm:$0xf0] %v222_v19 }
  0x90   : > { %v184_v20 = vpop.permute.xlu0 %183  ;;  %v200_v21 = vpop.permute.xlu1 %199 }
  0x91   : > { %v190_v22 = vsel %vm189_vm3, %v184_v20, %v186_v12  ;;  %v206_v23 = vsel %vm205_vm2, %v200_v21, %v202_v14 }
  0x92   : > { %195 = vst [vmem:[#allocation2] sm:$0xf0] %v190_v22  ;;  %211 = vst [vmem:[#allocation2 + $0x18] sm:$0xf] %v206_v23 }
  0x94   : > { %v215_v24 = vpop.permute.xlu0 %214  ;;  %v232_v25 = vpop.permute.xlu1 %231  ;;  %v307_v26 = vld [vmem:[#allocation2 + $0x10] sm:$0xff]  ;;  %v310_v27 = vld [vmem:[#allocation2 + $0x28] sm:$0xff] }
  0x95   : > { %v221_v28 = vsel %vm220_vm5, %v215_v24, %v217_v13  ;;  %v602_v29 = vpack.c.bf16 %v310_v27, %v307_v26  ;;  %v306_v30 = vld [vmem:[#allocation2 + $0x8] sm:$0xff]  ;;  %v309_v31 = vld [vmem:[#allocation2 + $0x20] sm:$0xff] }
  0x96   : > { %226 = vst [vmem:[#allocation2 + $0x18] sm:$0xf0] %v221_v28  ;;  %v593_v32 = vpack.c.bf16 %v309_v31, %v306_v30 }
  0x97   : > { %603 = vmatpush3.bf16.msra.mxu1 %v602_v29 }
  0x98   : > { %v234_v33 = vpop.permute.xlu0 %233  ;;  %v247_v34 = vpop.permute.xlu1 %246  ;;  %594 = vmatprep.subr.bf16.mxu0 %v593_v32  ;;  %604 = vmatprep.subr.bf16.mxu1 %v649_v4 }
  0x99   : > { %v237_v35 = vsel %vm235_vm6, %v232_v25, %v234_v33  ;;  %243 = vst.msk [vmem:[#allocation2 + $0x40] sm:$0xf] %vm179_vm0, %v234_v33  ;;  %v305_v39 = vld [vmem:[#allocation2] sm:$0xff] }
  0x9a   : > { %242 = vst [vmem:[#allocation2 + $0x38] sm:$0xf] %v237_v35 }
  0x9c   : > { %v249_v36 = vpop.permute.xlu0 %248  ;;  %v262_v37 = vpop.permute.xlu1 %261 }
  0x9d   : > { %v252_v38 = vsel %vm250_vm7, %v247_v34, %v249_v36  ;;  %258 = vst.msk [vmem:[#allocation2 + $0x40] sm:$0xf0] %vm197_vm4, %v249_v36  ;;  %v308_v40 = vld [vmem:[#allocation2 + $0x18] sm:$0xff] }
  0x9e   : > { %257 = vst [vmem:[#allocation2 + $0x38] sm:$0xf0] %v252_v38  ;;  %v595_v41 = vpack.c.bf16 %v308_v40, %v305_v39 }
  0xa0   : > { %v264_v42 = vpop.permute.xlu0 %263  ;;  %v277_v43 = vpop.permute.xlu1 %276  ;;  %596 = vmatpush1.bf16.msra.mxu0 %v595_v41 }
  0xa1   : > { %v267_v44 = vsel %vm265_vm8, %v262_v37, %v264_v42  ;;  %273 = vst.msk [vmem:[#allocation2 + $0x58] sm:$0xf] %vm179_vm0, %v264_v42 }
  0xa2   : > { %272 = vst [vmem:[#allocation2 + $0x50] sm:$0xf] %v267_v44 }
  0xa4   : > { %v279_v45 = vpop.permute.xlu0 %278  ;;  %v230_v46 = vpop.permute.xlu1 %229  ;;  %v313_v55 = vld [vmem:[#allocation2 + $0x40] sm:$0xff] }
  0xa5   : > { %v282_v47 = vsel %vm280_vm9, %v277_v43, %v279_v45  ;;  %288 = vst.msk [vmem:[#allocation2 + $0x58] sm:$0xf0] %vm197_vm4, %v279_v45  ;;  %v236_v48 = vsel %vm235_vm6, %v230_v46, %v232_v25  ;;  %v312_v59 = vld [vmem:[#allocation2 + $0x38] sm:$0xff] }
  0xa6   : > { %287 = vst [vmem:[#allocation2 + $0x50] sm:$0xf0] %v282_v47  ;;  %241 = vst [vmem:[#allocation2 + $0x30] sm:$0xf] %v236_v48 }
  0xa8   : > { %v245_v49 = vpop.permute.xlu0 %244  ;;  %v260_v50 = vpop.permute.xlu1 %259 }
  0xa9   : > { %v251_v51 = vsel %vm250_vm7, %v245_v49, %v247_v34  ;;  %v266_v52 = vsel %vm265_vm8, %v260_v50, %v262_v37 }
  0xaa   : > { %256 = vst [vmem:[#allocation2 + $0x30] sm:$0xf0] %v251_v51  ;;  %271 = vst [vmem:[#allocation2 + $0x48] sm:$0xf] %v266_v52 }
  0xac   : > { %v275_v53 = vpop.permute.xlu0 %274  ;;  %v292_v54 = vpop.permute.xlu1 %291  ;;  %v316_v56 = vld [vmem:[#allocation2 + $0x58] sm:$0xff] }
  0xad   : > { %v281_v57 = vsel %vm280_vm9, %v275_v53, %v277_v43  ;;  %v605_v58 = vpack.c.bf16 %v316_v56, %v313_v55  ;;  %v315_v60 = vld [vmem:[#allocation2 + $0x50] sm:$0xff] }
  0xae   : > { %286 = vst [vmem:[#allocation2 + $0x48] sm:$0xf0] %v281_v57  ;;  %v597_v61 = vpack.c.bf16 %v315_v60, %v312_v59 }
  0xaf   : > { %606 = vmatpush3.bf16.msra.mxu1 %v605_v58 }
  0xb0   : > { %v294_v62 = vpop.permute.xlu0 %293  ;;  %v290_v63 = vpop.permute.xlu1 %289  ;;  %598 = vmatprep.subr.bf16.mxu0 %v597_v61  ;;  %588 = vmatprep.subr.mxu1 %v654_v6 }
  0xb1   : > { %v297_v0 = vsel %vm295_vm10, %v292_v54, %v294_v62  ;;  %303 = vst.msk [vmem:[#allocation2 + $0x70] sm:$0xf] %vm179_vm0, %v294_v62  ;;  %v296_v1 = vsel %vm295_vm10, %v290_v63, %v292_v54  ;;  %v311_v2 = vld [vmem:[#allocation2 + $0x30] sm:$0xff] }
  0xb2   : > { %302 = vst [vmem:[#allocation2 + $0x68] sm:$0xf] %v297_v0  ;;  %301 = vst [vmem:[#allocation2 + $0x60] sm:$0xf] %v296_v1 }
  0xb5   : > { %v314_v3 = vld [vmem:[#allocation2 + $0x48] sm:$0xff] }
  0xb6   : > { %v599_v4 = vpack.c.bf16 %v314_v3, %v311_v2 }
  0xb8   : > { %600 = vmatpush1.bf16.msra.mxu0 %v599_v4  ;;  %v319_v7 = vld [vmem:[#allocation2 + $0x70] sm:$0xf] }
  0xb9   : > { %v318_v8 = vld [vmem:[#allocation2 + $0x68] sm:$0xf]  ;;  %589 = vmatpush3.msk.msra.mxu1 %vm330_vm11, %v319_v7  ;;  %v317_v6 = vld [vmem:[#allocation2 + $0x60] sm:$0xf] }
  0xba   : > { %567 = vmatprep.subr.msk.mxu0 %vm330_vm11, %v318_v8  ;;  %591 = vmatmul.mubr.msk.f32.vlgmr.msra.gmra.mrb[0].mxu1 %vm326_vm12, %v304_v5 }
  0xbc   : > { %568 = vmatpush1.msk.msra.mxu0 %vm330_vm11, %v317_v6 }
  0xbd   : > { %569 = vmatmul.mubr.msk.f32.vlgmr.msra.gmra.mrb[0].mxu0 %vm326_vm12, %v304_v5 }
  0xc1   : > { %v324_v9 = vpop.permute.xlu0 %323  ;;  %v486_v10 = vpop.permute.xlu1 %485 }
  0xc6   : > { %v493_v18 = vpop.permute.xlu1 %492 }
 0x18d   : > { %v477_v11 = vpop.f32.mrb[0].mxu1 }
 0x18e   : > { %v478_v12 = vadd.f32 %v477_v11, %v324_v9  ;;  %v592_v13 = vpop.f32.mrb[1].mxu1 }
 0x190   : > { %v483_v14 = vmax.f32 %v478_v12, 0.0  ;;  %v406_v15 = vpop.f32.mrb[0].mxu0 }
 0x191   : > { %v407_v16 = vadd.f32 %v406_v15, %v324_v9  ;;  %v408_v17 = vpop.f32.mrb[1].mxu0 }
 0x192   : > { %v490_v19 = vmul.f32 %v486_v10, %v483_v14  ;;  %v409_v20 = vadd.f32 %v408_v17, %v324_v9 }
 0x193   : > { %v481_v21 = vmax.f32 %v407_v16, 0.0 }
 0x194   : > { %v482_v22 = vmax.f32 %v409_v20, 0.0  ;;  %v497_v23 = vadd.f32 %v493_v18, %v490_v19 }
 0x195   : > { %v488_v24 = vmul.f32 %v486_v10, %v481_v21 }
 0x196   : > { %v489_v25 = vmul.f32 %v486_v10, %v482_v22  ;;  %v500_v26 = vmax.f32 %v497_v23, 0.0 }
 0x197   : > { %v495_v27 = vadd.f32 %v493_v18, %v488_v24 }
 0x198   : > { %v496_v28 = vadd.f32 %v493_v18, %v489_v25  ;;  %504 = vst.msk [vmem:[%s170_s6 + $0x10] sm:$0xff] %vm503_vm13, %v500_v26 }
 0x199   : > { %v498_v29 = vmax.f32 %v495_v27, 0.0 }
 0x19a   : > { %v499_v30 = vmax.f32 %v496_v28, 0.0 }
 0x19b   : > { %501 = vst [vmem:[%s170_s6] sm:$0xff] %v498_v29 }
 0x19c   : > { %502 = vst [vmem:[%s170_s6 + $0x8] sm:$0xff] %v499_v30 }
 0x19d PF: > { %s13_s12 = sadd.s32 1, %s644_s12  }
 0x19e   : > { %p10_p4 = scmp.ge.s32.totalorder %s13_s12, 4  }
 0x1a0   :  { %12 = sbr.rel (!%p10_p4) target bundleno = 1 (0x1), region = 62 }

</bundles_post_ra>
